<compile_context>
chip_gen: v5e
topology: v5e:2x2
jax: 0.10.0
libtpu: 0.0.40
codegen_flags: <defaults>
</compile_context>

<pallas_src>
import functools

import jax
import jax.numpy as jnp
from jax.experimental import pallas as pl
from jax.experimental.pallas import tpu as pltpu


def _convbn_kernel(x_ref, w_ref, scale_ref, bias_ref, o_ref, *, ksize, stride, act):
    """Grid = (batch, h_tile).

    x_ref:     (1, Hp, Wp, Cin)        zero-padded input image for this batch element
    w_ref:     (k*k*Cin, Cout_pad)     bf16 conv weights in im2col layout
    scale_ref: (1, Cout_pad)           folded BN scale (f32)
    bias_ref:  (1, Cout_pad)           folded BN bias  (f32)
    o_ref:     (1, TH, Wo, Cout_pad)   output row-tile
    """
    _, TH, Wo, Cp = o_ref.shape
    _, Hp, Wp, Cin = x_ref.shape

    h_idx = pl.program_id(1)
    rows_needed = (TH - 1) * stride + ksize
    row0 = pl.multiple_of(h_idx * (TH * stride), TH * stride)
    x = x_ref[0, pl.ds(row0, rows_needed), :, :]          # (rows_needed, Wp, Cin)

    # im2col: concatenate the k*k shifted windows along the contraction axis so the
    # convolution becomes ONE MXU matmul with K = k*k*Cin.
    taps = []
    for kh in range(ksize):
        for kw in range(ksize):
            taps.append(
                jax.lax.slice(
                    x,
                    (kh, kw, 0),
                    (kh + (TH - 1) * stride + 1, kw + (Wo - 1) * stride + 1, Cin),
                    (stride, stride, 1),
                )  # (TH, Wo, Cin)
            )
    slab = jnp.concatenate(taps, axis=-1).reshape(TH * Wo, ksize * ksize * Cin)

    # bf16 operands on the MXU, f32 accumulation.
    acc = jnp.dot(slab.astype(jnp.bfloat16), w_ref[...],
                  preferred_element_type=jnp.float32)      # (TH*Wo, Cout_pad) f32

    # Folded BatchNorm + optional activation: f32 epilogue, single final cast.
    y = acc * scale_ref[0] + bias_ref[0]
    if act == "relu":
        y = jnp.maximum(y, 0.0)
    o_ref[0] = y.reshape(TH, Wo, Cp).astype(o_ref.dtype)


def _largest_divisor_leq(n, target):
    best = 1
    for d in range(1, n + 1):
        if n % d == 0 and d <= target:
            best = d
    return best


def conv_bn_layer(
    x_nchw,
    conv_w_oihw,
    gamma,
    beta,
    running_mean,
    running_var,
    *,
    stride=1,
    act=None,
    eps=1e-5,
    tile_rows=8,
):
    """Forward pass of ConvBNLayer (eval mode). Input/output in NCHW (PyTorch convention)."""
    N, Cin, H, W = x_nchw.shape
    Cout, Cin_w, kh_, kw_ = conv_w_oihw.shape
    assert Cin_w == Cin, "groups > 1 not supported"
    assert kh_ == kw_
    k = kh_
    pad = (k - 1) // 2
    Ho = (H + 2 * pad - k) // stride + 1
    Wo = (W + 2 * pad - k) // stride + 1

    LANE = 128
    Cp = ((Cout + LANE - 1) // LANE) * LANE   # lane-dense (padded) output channels

    # ---- wrapper glue (plain JAX): layout + padding + BN folding ----
    x_nhwc = jnp.transpose(x_nchw, (0, 2, 3, 1))            # NCHW -> NHWC
    x_pad = jnp.pad(x_nhwc, ((0, 0), (pad, pad), (pad, pad), (0, 0)))
    Hp, Wp = H + 2 * pad, W + 2 * pad

    # OIHW -> (kh, kw, Cin, Cout) -> (k*k*Cin, Cout) -> pad Cout to 128 -> bf16.
    w = jnp.transpose(conv_w_oihw, (2, 3, 1, 0)).reshape(k * k * Cin, Cout)
    w = jnp.pad(w, ((0, 0), (0, Cp - Cout))).astype(jnp.bfloat16)

    inv_std = jax.lax.rsqrt(running_var.astype(jnp.float32) + eps)
    scale = gamma.astype(jnp.float32) * inv_std
    bias = beta.astype(jnp.float32) - running_mean.astype(jnp.float32) * scale
    scale = jnp.pad(scale, (0, Cp - Cout)).reshape(1, Cp)
    bias = jnp.pad(bias, (0, Cp - Cout)).reshape(1, Cp)

    # Output row-tile: largest divisor of Ho not exceeding tile_rows.
    TH = _largest_divisor_leq(Ho, tile_rows)
    n_h = Ho // TH

    kernel = functools.partial(_convbn_kernel, ksize=k, stride=stride, act=act)

    # Explicit VMEM budget: double-buffered input/output blocks + weights + headroom.
    itemsize = jnp.dtype(x_nchw.dtype).itemsize
    in_blk = Hp * Wp * Cin * itemsize
    out_blk = TH * Wo * Cp * itemsize
    need = 2 * in_blk + 2 * out_blk + w.size * 2 + 4 * Cp * 4
    vmem_limit = int(min(max(4 * need, 16 * 1024 * 1024), 48 * 1024 * 1024))

    out_nhwc = pl.pallas_call(
        kernel,
        out_shape=jax.ShapeDtypeStruct((N, Ho, Wo, Cp), x_nchw.dtype),
        grid_spec=pltpu.PrefetchScalarGridSpec(
            num_scalar_prefetch=0,
            grid=(N, n_h),
            in_specs=[
                pl.BlockSpec((1, Hp, Wp, Cin), lambda n, h: (n, 0, 0, 0)),
                pl.BlockSpec((k * k * Cin, Cp), lambda n, h: (0, 0)),
                pl.BlockSpec((1, Cp), lambda n, h: (0, 0)),
                pl.BlockSpec((1, Cp), lambda n, h: (0, 0)),
            ],
            out_specs=pl.BlockSpec((1, TH, Wo, Cp), lambda n, h: (n, h, 0, 0)),
        ),
        compiler_params=pltpu.CompilerParams(
            dimension_semantics=("parallel", "parallel"),
            vmem_limit_bytes=vmem_limit,
        ),
    )(x_pad, w, scale, bias)

    out_nhwc = out_nhwc[..., :Cout]                          # drop lane padding
    return jnp.transpose(out_nhwc, (0, 3, 1, 2))             # NHWC -> NCHW


def _reference(x_nchw, conv_w_oihw, gamma, beta, running_mean, running_var,
               *, stride, act, eps=1e-5):
    """Plain-JAX reference (eval-mode ConvBNLayer) for correctness check."""
    k = conv_w_oihw.shape[-1]
    pad = (k - 1) // 2
    y = jax.lax.conv_general_dilated(
        x_nchw, conv_w_oihw,
        window_strides=(stride, stride),
        padding=((pad, pad), (pad, pad)),
        dimension_numbers=("NCHW", "OIHW", "NCHW"),
    )
    inv_std = jax.lax.rsqrt(running_var + eps)
    y = (y - running_mean[None, :, None, None]) * inv_std[None, :, None, None]
    y = y * gamma[None, :, None, None] + beta[None, :, None, None]
    if act == "relu":
        y = jnp.maximum(y, 0.0)
    return y


if __name__ == "__main__":
    # Small shapes consistent with the module.
    N, Cin, H, W = 2, 4, 16, 16
    Cout, k, stride = 8, 3, 1
    act = "relu"

    key = jax.random.PRNGKey(0)
    kx, kw, kg, kb, km, kv = jax.random.split(key, 6)

    x = jax.random.normal(kx, (N, Cin, H, W), dtype=jnp.float32)
    # Conv2d weight (OIHW), no bias — deterministic synthetic init.
    conv_w = 0.1 * jax.random.normal(kw, (Cout, Cin, k, k), dtype=jnp.float32)
    # BatchNorm2d params + running stats (eval mode).
    gamma = 1.0 + 0.1 * jax.random.normal(kg, (Cout,), dtype=jnp.float32)
    beta = 0.1 * jax.random.normal(kb, (Cout,), dtype=jnp.float32)
    running_mean = 0.1 * jax.random.normal(km, (Cout,), dtype=jnp.float32)
    running_var = jax.random.uniform(kv, (Cout,), minval=0.5, maxval=1.5,
                                     dtype=jnp.float32)

    out = conv_bn_layer(x, conv_w, gamma, beta, running_mean, running_var,
                        stride=stride, act=act)
    out = jax.block_until_ready(out)

    ref = _reference(x, conv_w, gamma, beta, running_mean, running_var,
                     stride=stride, act=act)
    ref = jax.block_until_ready(ref)

    assert out.shape == (N, Cout, H // stride, W // stride), out.shape
    # bf16 MXU operands (f32 accumulation) -> slightly looser tolerance than pure f32.
    assert jnp.allclose(out, ref, atol=2e-2, rtol=2e-2), float(
        jnp.max(jnp.abs(out - ref)))

    print("KERNEL_OK")
</pallas_src>

<mosaic_0001>
module attributes {stable_mosaic.version = 11 : i64} {
  func.func @_convbn_kernel(%arg0: i32, %arg1: i32, %arg2: memref<1x18x18x4xf32, #tpu.memory_space<vmem>>, %arg3: memref<36x128xbf16, #tpu.memory_space<vmem>>, %arg4: memref<1x128xf32, #tpu.memory_space<vmem>>, %arg5: memref<1x128xf32, #tpu.memory_space<vmem>>, %arg6: memref<1x8x16x128xf32, #tpu.memory_space<vmem>>) attributes {dimension_semantics = [#tpu.dimension_semantics<parallel>, #tpu.dimension_semantics<parallel>], iteration_bounds = array<i64: 2, 2>, scalar_prefetch = 0 : i64, scratch_operands = 0 : i64, tpu.core_type = #tpu.core_type<tc>, window_params = [{transform_indices = @transform_0, window_bounds = array<i64: 1, 18, 18, 4>}, {pipeline_mode = #tpu.pipeline_mode<synchronous>, transform_indices = @transform_1, window_bounds = array<i64: 36, 128>}, {pipeline_mode = #tpu.pipeline_mode<synchronous>, transform_indices = @transform_2, window_bounds = array<i64: 1, 128>}, {pipeline_mode = #tpu.pipeline_mode<synchronous>, transform_indices = @transform_3, window_bounds = array<i64: 1, 128>}, {transform_indices = @transform_4, window_bounds = array<i64: 1, 8, 16, 128>}]} {
    %c8_i32 = arith.constant 8 : i32
    %0 = arith.muli %arg1, %c8_i32 : i32
    %1 = tpu.assume_multiple %0, 8 : i32
    %c0 = arith.constant 0 : index
    %2 = arith.index_cast %1 : i32 to index
    %c0_0 = arith.constant 0 : index
    %c0_1 = arith.constant 0 : index
    %3 = vector.load %arg2[%c0, %2, %c0_0, %c0_1] : memref<1x18x18x4xf32, #tpu.memory_space<vmem>>, vector<1x10x18x4xf32>
    %4 = vector.shape_cast %3 : vector<1x10x18x4xf32> to vector<10x18x4xf32>
    %5 = vector.extract_strided_slice %4 {offsets = [0, 0, 0], sizes = [8, 16, 4], strides = [1, 1, 1]} : vector<10x18x4xf32> to vector<8x16x4xf32>
    %6 = vector.extract_strided_slice %4 {offsets = [0, 1, 0], sizes = [8, 16, 4], strides = [1, 1, 1]} : vector<10x18x4xf32> to vector<8x16x4xf32>
    %7 = vector.extract_strided_slice %4 {offsets = [0, 2, 0], sizes = [8, 16, 4], strides = [1, 1, 1]} : vector<10x18x4xf32> to vector<8x16x4xf32>
    %8 = vector.extract_strided_slice %4 {offsets = [1, 0, 0], sizes = [8, 16, 4], strides = [1, 1, 1]} : vector<10x18x4xf32> to vector<8x16x4xf32>
    %9 = vector.extract_strided_slice %4 {offsets = [1, 1, 0], sizes = [8, 16, 4], strides = [1, 1, 1]} : vector<10x18x4xf32> to vector<8x16x4xf32>
    %10 = vector.extract_strided_slice %4 {offsets = [1, 2, 0], sizes = [8, 16, 4], strides = [1, 1, 1]} : vector<10x18x4xf32> to vector<8x16x4xf32>
    %11 = vector.extract_strided_slice %4 {offsets = [2, 0, 0], sizes = [8, 16, 4], strides = [1, 1, 1]} : vector<10x18x4xf32> to vector<8x16x4xf32>
    %12 = vector.extract_strided_slice %4 {offsets = [2, 1, 0], sizes = [8, 16, 4], strides = [1, 1, 1]} : vector<10x18x4xf32> to vector<8x16x4xf32>
    %13 = vector.extract_strided_slice %4 {offsets = [2, 2, 0], sizes = [8, 16, 4], strides = [1, 1, 1]} : vector<10x18x4xf32> to vector<8x16x4xf32>
    %14 = tpu.concatenate %5, %6, %7, %8, %9, %10, %11, %12, %13 in 2 : vector<8x16x4xf32>, vector<8x16x4xf32>, vector<8x16x4xf32>, vector<8x16x4xf32>, vector<8x16x4xf32>, vector<8x16x4xf32>, vector<8x16x4xf32>, vector<8x16x4xf32>, vector<8x16x4xf32> -> vector<8x16x36xf32>
    %15 = vector.shape_cast %14 : vector<8x16x36xf32> to vector<128x36xf32>
    %16 = arith.truncf %15 : vector<128x36xf32> to vector<128x36xbf16>
    %c0_2 = arith.constant 0 : index
    %c0_3 = arith.constant 0 : index
    %17 = vector.load %arg3[%c0_2, %c0_3] : memref<36x128xbf16, #tpu.memory_space<vmem>>, vector<36x128xbf16>
    %cst = arith.constant dense<0.000000e+00> : vector<128x128xf32>
    %18 = tpu.matmul %16, %17, %cst {dimension_numbers = #tpu.dot_dimension_numbers<[1], [0], [0], [1], [0, 0, 1, 1], [], []>} : vector<128x36xbf16>, vector<36x128xbf16>, vector<128x128xf32> -> vector<128x128xf32>
    %c0_4 = arith.constant 0 : index
    %c0_5 = arith.constant 0 : index
    %19 = vector.load %arg4[%c0_4, %c0_5] : memref<1x128xf32, #tpu.memory_space<vmem>>, vector<1x128xf32>
    %20 = vector.shape_cast %19 : vector<1x128xf32> to vector<128xf32>
    %21 = vector.shape_cast %20 : vector<128xf32> to vector<1x128xf32>
    %22 = vector.broadcast %21 : vector<1x128xf32> to vector<128x128xf32>
    %23 = arith.mulf %18, %22 : vector<128x128xf32>
    %c0_6 = arith.constant 0 : index
    %c0_7 = arith.constant 0 : index
    %24 = vector.load %arg5[%c0_6, %c0_7] : memref<1x128xf32, #tpu.memory_space<vmem>>, vector<1x128xf32>
    %25 = vector.shape_cast %24 : vector<1x128xf32> to vector<128xf32>
    %26 = vector.shape_cast %25 : vector<128xf32> to vector<1x128xf32>
    %27 = vector.broadcast %26 : vector<1x128xf32> to vector<128x128xf32>
    %28 = arith.addf %23, %27 : vector<128x128xf32>
    %cst_8 = arith.constant 0.000000e+00 : f32
    %29 = vector.broadcast %cst_8 : f32 to vector<128x128xf32>
    %30 = arith.maximumf %28, %29 : vector<128x128xf32>
    %31 = vector.shape_cast %30 : vector<128x128xf32> to vector<8x16x128xf32>
    %c0_9 = arith.constant 0 : index
    %c0_10 = arith.constant 0 : index
    %c0_11 = arith.constant 0 : index
    %c0_12 = arith.constant 0 : index
    %32 = vector.load %arg6[%c0_9, %c0_10, %c0_11, %c0_12] : memref<1x8x16x128xf32, #tpu.memory_space<vmem>>, vector<1x8x16x128xf32>
    %33 = vector.shape_cast %32 : vector<1x8x16x128xf32> to vector<8x16x128xf32>
    %34 = vector.shape_cast %31 : vector<8x16x128xf32> to vector<1x8x16x128xf32>
    tpu.vector_store %arg6[%c0_9, %c0_10, %c0_11, %c0_12], %34 {strides = array<i32>} : memref<1x8x16x128xf32, #tpu.memory_space<vmem>>, vector<1x8x16x128xf32>,
    return
  }
  func.func @transform_0(%arg0: i32, %arg1: i32) -> (i32, i32, i32, i32) {
    %c0_i32 = arith.constant 0 : i32
    %c0_i32_0 = arith.constant 0 : i32
    %c0_i32_1 = arith.constant 0 : i32
    %c0_i32_2 = arith.constant 0 : i32
    return %arg0, %c0_i32, %c0_i32_0, %c0_i32_1 : i32, i32, i32, i32
  }
  func.func @transform_1(%arg0: i32, %arg1: i32) -> (i32, i32) {
    %c0_i32 = arith.constant 0 : i32
    %c0_i32_0 = arith.constant 0 : i32
    %c0_i32_1 = arith.constant 0 : i32
    return %c0_i32, %c0_i32_0 : i32, i32
  }
  func.func @transform_2(%arg0: i32, %arg1: i32) -> (i32, i32) {
    %c0_i32 = arith.constant 0 : i32
    %c0_i32_0 = arith.constant 0 : i32
    %c0_i32_1 = arith.constant 0 : i32
    return %c0_i32, %c0_i32_0 : i32, i32
  }
  func.func @transform_3(%arg0: i32, %arg1: i32) -> (i32, i32) {
    %c0_i32 = arith.constant 0 : i32
    %c0_i32_0 = arith.constant 0 : i32
    %c0_i32_1 = arith.constant 0 : i32
    return %c0_i32, %c0_i32_0 : i32, i32
  }
  func.func @transform_4(%arg0: i32, %arg1: i32) -> (i32, i32, i32, i32) {
    %c0_i32 = arith.constant 0 : i32
    %c0_i32_0 = arith.constant 0 : i32
    %c0_i32_1 = arith.constant 0 : i32
    return %arg0, %arg1, %c0_i32, %c0_i32_0 : i32, i32, i32, i32
  }
}

</mosaic_0001>

<bundles_post_ra>
// kernel: tpu_custom_call.1
= control target key start
LH: loop header
LB: loop body
LE: loop exit
PB: predicated region body
PF: predicated region fallthrough
CT: control target
= control target key end

     0   :  { %9 = vsyncpa [#allocation3], 0  ;;  %s2547_s0 = inlined_call_operand.vmem [shape: f32[2,18,18,4], index: 0, kind: input, shape index: {}]   ;;  %s2548_s1 = inlined_call_operand.vmem [shape: bf16[36,128], index: 1, kind: input, shape index: {}]   ;;  %s2549_s2 = inlined_call_operand.vmem [shape: f32[1,128], index: 2, kind: input, shape index: {}]   ;;  %s2550_s3 = inlined_call_operand.vmem [shape: f32[1,128], index: 3, kind: input, shape index: {}]   ;;  %s2551_s4 = inlined_call_operand.hbm [shape: f32[2,16,16,128], index: 4, kind: output, shape index: {}]  }
   0x1   :  { %11 = vsyncpa [#allocation3 + $0x1], 0  ;;  %s1749_s15 = smov 0   ;;  %s1751_s16 = smov 0  }
   0x2   :  { %s1753_s17 = smov 0   ;;  %s1755_s18 = smov 0  }
   0x3   :  { %s1757_s19 = smov 0   ;;  %s1759_s20 = smov 0  }
   0x4   :  { %s1761_s21 = smov 0   ;;  %s1763_s22 = smov 0  }
   0x5 LB: > { %s1172_s23 = sadd.s32 4294967295, %s1713_s22   ;;  %s1173_s24 = sadd.s32 4294967294, %s1713_s22   ;;  %s1713_s22 = sphi %s1763_s22, %s17_s22   ;;  %s1709_s21 = sphi %s1761_s21, %s2560_s21   ;;  %s1705_s20 = sphi %s1759_s20, %s2559_s20   ;;  %s1701_s19 = sphi %s1757_s19, %s2558_s19   ;;  %s1697_s18 = sphi %s1755_s18, %s2557_s18   ;;  %s1693_s17 = sphi %s1753_s17, %s2556_s17   ;;  %s1689_s16 = sphi %s1751_s16, %s2555_s16   ;;  %s1685_s15 = sphi %s1749_s15, %s2554_s15  }
   0x6   : > { %s26_s25 = sadd.s32 1, %s1705_s20  ;;  %s29_s26 = sadd.s32 1, %s1709_s21 }
   0x7   : > { %p27_p0 = scmp.ge.s32.totalorder %s26_s25, 2  ;;  %p137_p1 = scmp.ne.s32.totalorder %s1693_s17, %s1689_s16 }
   0x8   : > { %p138_p2 = scmp.eq.s32.totalorder %s1172_s23, 3  ;;  %p143_p5 = scmp.ne.s32.totalorder %s1689_s16, %s1685_s15 }
   0x9   : > { %s2562_s25 = smov (%p27_p0, %s26_s25), 0  ;;  %s2564_s26 = smov (!%p27_p0, %s29_s26), %s1709_s21 }
   0xa   : > { %s123_s27 = ssub.s32 %s1705_s20, %s2562_s25  ;;  %p1800_p3 = por %p138_p2, %p137_p1 }
   0xb   : > { %p31_p4 = scmp.ge.s32.totalorder %s2564_s26, 2  ;;  %p144_p6 = scmp.eq.s32.totalorder %s1173_s24, 3 }
   0xc   : > { %p1176_p7 = scmp.ge.s32.totalorder %s1713_s22, 1  ;;  %p179_p9 = scmp.lt.s32.totalorder %s1713_s22, 5 }
   0xd   : > { %s2566_s26 = smov (%p31_p4, %s2564_s26), 0  ;;  %p1809_p8 = por %p144_p6, %p143_p5 }
   0xe   : > { %s122_s30 = ssub.s32 %s1709_s21, %s2566_s26  ;;  %s127_s5 = sadd.s32 1, %s1693_s17 }
   0xf   : > { %s124_s6 = sor.u32 %s123_s27, %s122_s30  ;;  %p180_p10 = pnand %p1176_p7, %p179_p9 }
  0x10   : > { %p125_p11 = scmp.eq.s32.totalorder %s124_s6, 0  ;;  %p205_p12 = scmp.lt.s32.totalorder (!%p180_p10), %s1701_s19, 1 }
  0x11   : > { %183 = sbr.rel (%p180_p10) target bundleno = 469 (0x1d5), region = 36  ;;  %s1715_s23 = smov (!%p180_p10), 4  }
  0x12   : > { %s1818_s7 = scalar_select %p125_p11, %s1693_s17, %s127_s5  }
  0x13   : > { %s1180_s9 = smul.u32 (!%p180_p10), 192, %s1697_s18  ;;  %s1716_s24 = smov (!%p180_p10), 8  }
  0x14   : > { %s1717_s27 = smov (!%p180_p10), 12   ;;  %s1718_s30 = smov (!%p180_p10), 16  }
  0x15   : > { %s1719_s5 = smov (!%p180_p10), 20   ;;  %s1720_s6 = smov (!%p180_p10), 28  }
  0x16   : > { %s206_s8 = scalar_select %p205_p12, %s1701_s19, 1  ;;  %vm269_vm0 = vcmask 1046528   ;;  %vm358_vm1 = vcmask 1045504   ;;  %vm761_vm2 = vcmask 31744   ;;  %vm778_vm3 = vcmask 64512  }
  0x17   : > { %vm795_vm4 = vcmask 97280   ;;  %vm950_vm5 = vcmask 1041408   ;;  %vm812_vm6 = vcmask 130048   ;;  %vm829_vm7 = vcmask 162816   ;;  %s1206_s11 = sshll.u32 %s1697_s18, 4  ;;  %s1200_s12 = sshll.u32 %s1701_s19, 5 }
  0x18   : > { %s1216_s10 = smul.u32 432, %s206_s8  ;;  %s1721_s8 = smov 24   ;;  %vm846_vm8 = vcmask 195584   ;;  %vm863_vm9 = vcmask 228352   ;;  %vm880_vm10 = vcmask 261120   ;;  %vm925_vm11 = vcmask 293888  }
  0x1a   : > { %s209_s13 = scalar_lea.vmem %s2547_s0, %s1216_s10 }
  0x1b   : > { %s1826_s14 = scalar_lea.vmem %s209_s13, %s1180_s9  ;;  %s1722_s9 = smov 32  }
  0x1c   : > { %v1829_v0 = vld [vmem:[%s1826_s14 + $0x60] sm:$0xff]  ;;  %v1832_v1 = vld [vmem:[%s1826_s14 + $0x68] sm:$0xff]  ;;  %v1835_v2 = vld [vmem:[%s1826_s14 + $0x70] sm:$0x3]  ;;  %s1088_s13 = sadd.s32 %s1206_s11, %s1200_s12 }
  0x1d   : > { %v290_v3 = vrot.slane %v1829_v0, 1  ;;  %v291_v4 = vrot.slane %v1832_v1, 1  ;;  %v293_v5 = vrot.slane %v1835_v2, 1  ;;  %v1841_v6 = vld [vmem:[%s1826_s14 + $0x30] sm:$0xff]  ;;  %v1844_v7 = vld [vmem:[%s1826_s14 + $0x38] sm:$0xff]  ;;  %v1852_v11 = vld [vmem:[%s1826_s14] sm:$0xff] }
  0x1e   : > { %v1847_v8 = vld [vmem:[%s1826_s14 + $0x40] sm:$0x3]  ;;  %v280_v9 = vrot.slane %v1841_v6, 1  ;;  %v281_v10 = vrot.slane %v1844_v7, 1  ;;  %v1855_v12 = vld [vmem:[%s1826_s14 + $0x8] sm:$0xff]  ;;  %v1862_v17 = vld [vmem:[%s1826_s14 + $0x78] sm:$0xff] }
  0x1f   : > { %v292_v13 = vsel %vm269_vm0, %v290_v3, %v291_v4  ;;  %v294_v14 = vsel %vm269_vm0, %v291_v4, %v293_v5  ;;  %v283_v15 = vrot.slane %v1847_v8, 1  ;;  %v217_v16 = vld [vmem:[%s1826_s14 + $0x10] sm:$0x3]  ;;  %v1865_v18 = vld [vmem:[%s1826_s14 + $0x80] sm:$0xff]  ;;  %v270_v21 = vrot.slane %v1852_v11, 1  ;;  %v1876_v24 = vld [vmem:[%s1826_s14 + $0x48] sm:$0xff] }
  0x20   : > { %v1867_v19 = vpack.i.bf16 %v294_v14, %v292_v13  ;;  %v282_v20 = vsel %vm269_vm0, %v280_v9, %v281_v10  ;;  %v271_v22 = vrot.slane %v1855_v12, 1  ;;  %v1873_v23 = vld [vmem:[%s1826_s14 + $0x88] sm:$0x3]  ;;  %v1879_v25 = vld [vmem:[%s1826_s14 + $0x50] sm:$0xff]  ;;  %v273_v27 = vrot.slane %v217_v16, 1  ;;  %v1887_v30 = vld [vmem:[%s1826_s14 + $0x18] sm:$0xff] }
  0x21   : > { %v284_v26 = vsel %vm269_vm0, %v281_v10, %v283_v15  ;;  %v295_v28 = vrot.slane %v1862_v17, 1  ;;  %v1884_v29 = vld [vmem:[%s1826_s14 + $0x58] sm:$0x3]  ;;  %v296_v33 = vrot.slane %v1865_v18, 1  ;;  %v298_v34 = vrot.slane %v1873_v23, 1  ;;  %v1897_v35 = vld [vmem:[%s1826_s14 + $0x20] sm:$0xff] }
  0x22   : > { %1318 = vrot.lane.b32.xlu2 %v1867_v19, %s1715_s23  ;;  %v1891_v31 = vpack.i.bf16 %v284_v26, %v282_v20  ;;  %v272_v32 = vsel %vm269_vm0, %v270_v21, %v271_v22  ;;  %v274_v36 = vsel %vm269_vm0, %v271_v22, %v273_v27  ;;  %v285_v37 = vrot.slane %v1876_v24, 1  ;;  %v1904_v40 = vld [vmem:[%s1826_s14 + $0x28] sm:$0x3]  ;;  %v1922_v51 = vld [vmem:[%s1826_s14 + $0xb0] sm:$0xff]  ;;  %v1925_v52 = vld [vmem:[%s1826_s14 + $0xb8] sm:$0x3] }
  0x23   : > { %v286_v38 = vrot.slane %v1879_v25, 1  ;;  %v288_v39 = vrot.slane %v1884_v29, 1  ;;  %v1297_v41 = vpack.i.bf16 %v274_v36, %v272_v32  ;;  %v297_v42 = vsel %vm269_vm0, %v295_v28, %v296_v33  ;;  %v1919_v50 = vld [vmem:[%s1826_s14 + $0xa8] sm:$0xff]  ;;  %v1931_v57 = vld [vmem:[%s1826_s14 + $0x90] sm:$0xff]  ;;  %v1934_v58 = vld [vmem:[%s1826_s14 + $0x98] sm:$0xff] }
  0x24   : > { %1308 = vrot.lane.b32.xlu1 %v1891_v31, %s1715_s23  ;;  %v299_v43 = vsel %vm269_vm0, %v296_v33, %v298_v34  ;;  %v275_v44 = vrot.slane %v1887_v30, 1  ;;  %v276_v47 = vrot.slane %v1897_v35, 1  ;;  %v278_v49 = vrot.slane %v1904_v40, 1  ;;  %v235_v61 = vld [vmem:[%s1826_s14 + $0xa0] sm:$0x3] }
  0x25   : > { %v287_v45 = vsel %vm269_vm0, %v285_v37, %v286_v38  ;;  %v289_v46 = vsel %vm269_vm0, %v286_v38, %v288_v39  ;;  %1298 = vrot.lane.b32.xlu0 %v1297_v41, %s1715_s23  ;;  %v1915_v48 = vpack.i.bf16 %v299_v43, %v297_v42  ;;  %v362_v53 = vrot.slane %v217_v16, 2 }
  0x26   : > { %v277_v54 = vsel %vm269_vm0, %v275_v44, %v276_v47  ;;  %v359_v55 = vrot.slane %v1852_v11, 2  ;;  %v360_v56 = vrot.slane %v1855_v12, 2  ;;  %v1936_v59 = vpack.i.bf16 %v289_v46, %v287_v45 }
  0x27   : > { %v279_v60 = vsel %vm269_vm0, %v276_v47, %v278_v49  ;;  %v305_v62 = vrot.slane %v1919_v50, 1  ;;  %v306_v63 = vrot.slane %v1922_v51, 1  ;;  %v308_v3 = vrot.slane %v1925_v52, 1 }
  0x28   : > { %v1945_v4 = vpack.i.bf16 %v279_v60, %v277_v54  ;;  %v300_v5 = vrot.slane %v1931_v57, 1  ;;  %v301_v9 = vrot.slane %v1934_v58, 1  ;;  %v361_v10 = vsel %vm358_vm1, %v359_v55, %v360_v56 }
  0x29   : > { %v363_v13 = vsel %vm358_vm1, %v360_v56, %v362_v53  ;;  %v303_v14 = vrot.slane %v235_v61, 1  ;;  %v1954_v15 = vsel %vm269_vm0, %v305_v62, %v306_v63  ;;  %v1957_v16 = vsel %vm269_vm0, %v306_v63, %v308_v3 }
  0x2a   : > { %1323 = vrot.lane.b32.xlu2 %v1915_v48, %s1715_s23  ;;  %v1337_v20 = vpack.i.bf16 %v363_v13, %v361_v10  ;;  %v1962_v21 = vsel %vm269_vm0, %v300_v5, %v301_v9  ;;  %v374_v26 = vrot.slane %v1876_v24, 2  ;;  %v375_v27 = vrot.slane %v1879_v25, 2 }
  0x2b   : > { %v1965_v22 = vsel %vm269_vm0, %v301_v9, %v303_v14  ;;  %v377_v28 = vrot.slane %v1884_v29, 2  ;;  %v1972_v32 = vpack.i.bf16 %v1957_v16, %v1954_v15  ;;  %v372_v33 = vrot.slane %v1847_v8, 2 }
  0x2c   : > { %1313 = vrot.lane.b32.xlu1 %v1936_v59, %s1715_s23  ;;  %v369_v34 = vrot.slane %v1841_v6, 2  ;;  %v370_v36 = vrot.slane %v1844_v7, 2  ;;  %v1980_v37 = vpack.i.bf16 %v1965_v22, %v1962_v21  ;;  %v364_v38 = vrot.slane %v1887_v30, 2 }
  0x2d   : > { %1303 = vrot.lane.b32.xlu0 %v1945_v4, %s1715_s23  ;;  %v365_v29 = vrot.slane %v1897_v35, 2  ;;  %v376_v39 = vsel %vm358_vm1, %v374_v26, %v375_v27  ;;  %v378_v41 = vsel %vm358_vm1, %v375_v27, %v377_v28  ;;  %v367_v8 = vrot.slane %v1904_v40, 2 }
  0x2e   : > { %v371_v42 = vsel %vm358_vm1, %v369_v34, %v370_v36  ;;  %v373_v43 = vsel %vm358_vm1, %v370_v36, %v372_v33  ;;  %v1993_v44 = vpack.i.bf16 %v378_v41, %v376_v39  ;;  %v389_v47 = vrot.slane %v1931_v57, 2 }
  0x2f   : > { %v366_v45 = vsel %vm358_vm1, %v364_v38, %v365_v29  ;;  %v368_v46 = vsel %vm358_vm1, %v365_v29, %v367_v8  ;;  %v390_v40 = vrot.slane %v1934_v58, 2  ;;  %v392_v49 = vrot.slane %v235_v61, 2  ;;  %v239_v8 = vld [vmem:[%s1826_s14 + $0xc0] sm:$0xff] }
  0x30   : > { %v1999_v53 = vpack.i.bf16 %v373_v43, %v371_v42  ;;  %v384_v54 = vrot.slane %v1862_v17, 2  ;;  %v385_v55 = vrot.slane %v1865_v18, 2  ;;  %v387_v56 = vrot.slane %v1873_v23, 2  ;;  %v240_v42 = vld [vmem:[%s1826_s14 + $0xc8] sm:$0xff] }
  0x31   : > { %v382_v60 = vrot.slane %v1835_v2, 2  ;;  %v2007_v62 = vpack.i.bf16 %v368_v46, %v366_v45  ;;  %v391_v63 = vsel %vm358_vm1, %v389_v47, %v390_v40  ;;  %v393_v3 = vsel %vm358_vm1, %v390_v40, %v392_v49 }
  0x32   : > { %1338 = vrot.lane.b32.xlu2 %v1337_v20, %s1716_s24  ;;  %v379_v61 = vrot.slane %v1829_v0, 2  ;;  %v380_v5 = vrot.slane %v1832_v1, 2  ;;  %v386_v23 = vsel %vm358_vm1, %v384_v54, %v385_v55  ;;  %v388_v2 = vsel %vm358_vm1, %v385_v55, %v387_v56 }
  0x33   : > { %v2019_v9 = vpack.i.bf16 %v393_v3, %v391_v63  ;;  %v2023_v14 = vpack.i.bf16 %v388_v2, %v386_v23  ;;  %v394_v26 = vrot.slane %v1919_v50, 2  ;;  %v395_v27 = vrot.slane %v1922_v51, 2 }
  0x34   : > { %1333 = vrot.lane.b32.xlu1 %v1972_v32, %s1715_s23  ;;  %v381_v10 = vsel %vm358_vm1, %v379_v61, %v380_v5  ;;  %v383_v13 = vsel %vm358_vm1, %v380_v5, %v382_v60  ;;  %v397_v28 = vrot.slane %v1925_v52, 2  ;;  %v1382_v33 = vpack.i.bf16 %v1844_v7, %v1841_v6 }
  0x35   : > { %1328 = vrot.lane.b32.xlu0 %v1980_v37, %s1715_s23  ;;  %v2027_v20 = vpack.i.bf16 %v383_v13, %v381_v10  ;;  %v396_v34 = vsel %vm358_vm1, %v394_v26, %v395_v27  ;;  %v1377_v38 = vpack.i.bf16 %v1897_v35, %v1887_v30  ;;  %v2048_v29 = vpack.i.bf16 %v1865_v18, %v1862_v17 }
  0x36   : > { %v398_v36 = vsel %vm358_vm1, %v395_v27, %v397_v28  ;;  %v1392_v39 = vpack.i.bf16 %v1832_v1, %v1829_v0  ;;  %v2055_v41 = vpack.i.bf16 %v1879_v25, %v1876_v24  ;;  %v1412_v43 = vpack.i.bf16 %v240_v42, %v239_v8 }
  0x37   : > { %v2042_v52 = vpack.i.bf16 %v398_v36, %v396_v34  ;;  %v2062_v45 = vpack.i.bf16 %v1922_v51, %v1919_v50  ;;  %v1402_v46 = vpack.i.bf16 %v1934_v58, %v1931_v57  ;;  %v1442_v47 = vpack.i.bf16 %v1954_v15, %v1962_v21  ;;  %v243_v36 = vld [vmem:[%s1826_s14 + $0xe0] sm:$0xff] }
  0x38   : > { %v1447_v40 = vpack.i.bf16 %v1965_v22, %v1957_v16  ;;  %v551_v15 = vrot.slane %v239_v8, 2  ;;  %v552_v21 = vrot.slane %v240_v42, 2  ;;  %v498_v54 = vrot.slane %v239_v8, 1 }
  0x39   : > { %v499_v60 = vrot.slane %v240_v42, 1 }
  0x3a   : > { %1353 = vrot.lane.b32.xlu2 %v1993_v44, %s1716_s24  ;;  %v553_v55 = vsel %vm358_vm1, %v551_v15, %v552_v21 }
  0x3b   : > { %v500_v3 = vsel %vm269_vm0, %v498_v54, %v499_v60 }
  0x3c   : > { %1348 = vrot.lane.b32.xlu1 %v1999_v53, %s1716_s24 }
  0x3d   : > { %1343 = vrot.lane.b32.xlu0 %v2007_v62, %s1716_s24 }
  0x42   : > { %1368 = vrot.lane.b32.xlu2 %v2019_v9, %s1716_s24 }
  0x44   : > { %1363 = vrot.lane.b32.xlu1 %v2023_v14, %s1716_s24 }
  0x45   : > { %1358 = vrot.lane.b32.xlu0 %v2027_v20, %s1716_s24 }
  0x4a   : > { %1383 = vrot.lane.b32.xlu2 %v1382_v33, %s1717_s27 }
  0x4c   : > { %1378 = vrot.lane.b32.xlu1 %v1377_v38, %s1717_s27  ;;  %v244_v38 = vld [vmem:[%s1826_s14 + $0xe8] sm:$0x3] }
  0x4d   : > { %1373 = vrot.lane.b32.xlu0 %v2042_v52, %s1716_s24 }
  0x52   : > { %1398 = vrot.lane.b32.xlu2 %v2048_v29, %s1717_s27 }
  0x54   : > { %1393 = vrot.lane.b32.xlu1 %v1392_v39, %s1717_s27 }
  0x55   : > { %1388 = vrot.lane.b32.xlu0 %v2055_v41, %s1717_s27 }
  0x5a   : > { %1413 = vrot.lane.b32.xlu2 %v1412_v43, %s1717_s27 }
  0x5c   : > { %1408 = vrot.lane.b32.xlu1 %v2062_v45, %s1717_s27 }
  0x5d   : > { %1403 = vrot.lane.b32.xlu0 %v1402_v46, %s1717_s27 }
  0x62   : > { %1428 = vrot.lane.b32.xlu2 %v1936_v59, %s1718_s30 }
  0x64   : > { %1423 = vrot.lane.b32.xlu1 %v1891_v31, %s1718_s30 }
  0x65   : > { %1418 = vrot.lane.b32.xlu0 %v1945_v4, %s1718_s30  ;;  %v241_v4 = vld [vmem:[%s1826_s14 + $0xd0] sm:$0x3] }
  0x66   : > { %v554_v49 = vrot.slane %v241_v4, 2  ;;  %v501_v16 = vrot.slane %v241_v4, 1  ;;  %v658_v4 = vrot.slane %v244_v38, 1 }
  0x68   : > { %v555_v56 = vsel %vm358_vm1, %v552_v21, %v554_v49  ;;  %v502_v61 = vsel %vm269_vm0, %v499_v60, %v501_v16 }
  0x69   : > { %v1487_v63 = vpack.i.bf16 %v555_v56, %v553_v55 }
  0x6a   : > { %1443 = vrot.lane.b32.xlu2 %v1442_v47, %s1718_s30 }
  0x6c   : > { %1438 = vrot.lane.b32.xlu1 %v1915_v48, %s1718_s30 }
  0x6d   : > { %1433 = vrot.lane.b32.xlu0 %v1867_v19, %s1718_s30 }
  0x72   : > { %1458 = vrot.lane.b32.xlu2 %v2042_v52, %s1719_s5 }
  0x74   : > { %1453 = vrot.lane.b32.xlu1 %v2023_v14, %s1719_s5 }
  0x75   : > { %1448 = vrot.lane.b32.xlu0 %v1447_v40, %s1718_s30  ;;  %v656_v40 = vrot.slane %v243_v36, 1 }
  0x7a   : > { %1473 = vrot.lane.b32.xlu2 %v1980_v37, %s1720_s6  ;;  %v1477_v37 = vpack.i.bf16 %v502_v61, %v500_v3 }
  0x7c   : > { %1468 = vrot.lane.b32.xlu1 %v1412_v43, %s1721_s8  ;;  %v2093_v22 = vpop.permute.xlu2 %1318 }
  0x7d   : > { %1463 = vrot.lane.b32.xlu0 %v1402_v46, %s1721_s8 }
  0x82   : > { %1488 = vrot.lane.b32.xlu2 %v1487_v63, %s1722_s9 }
  0x84   : > { %1483 = vrot.lane.b32.xlu1 %v2019_v9, %s1722_s9  ;;  %v2101_v5 = vpop.permute.xlu2 %1323 }
  0x85   : > { %1478 = vrot.lane.b32.xlu0 %v1477_v37, %s1720_s6 }
  0x8a   : > { %1503 = vrot.lane.b32.xlu2 %v1382_v33, %s1721_s8  ;;  %v242_v33 = vld [vmem:[%s1826_s14 + $0xd8] sm:$0xff]  ;;  %s1201_s14 = sshll.u32 %s1088_s13, 3  ;;  %s1639_s13 = scalar_lea.hbm %s2551_s4, 512 }
  0x8b   : > { %s1090_s23 = scalar_lea.hbm %s2551_s4, %s1201_s14 }
  0x8c   : > { %1498 = vrot.lane.b32.xlu1 %v1993_v44, %s1719_s5  ;;  %v1339_v23 = vpop.permute.xlu2 %1338 }
  0x8d   : > { %1493 = vrot.lane.b32.xlu0 %v2007_v62, %s1719_s5  ;;  %v1341_v13 = vunpack.i.h.bf16 %v1339_v23  ;;  %v1340_v26 = vunpack.i.l.bf16 %v1339_v23 }
  0x92   : > { %1518 = vrot.lane.b32.xlu2 %v1867_v19, %s1720_s6 }
  0x94   : > { %1513 = vrot.lane.b32.xlu1 %v1891_v31, %s1720_s6  ;;  %v1354_v2 = vpop.permute.xlu2 %1353 }
  0x95   : > { %1508 = vrot.lane.b32.xlu0 %v1392_v39, %s1721_s8  ;;  %v1356_v42 = vunpack.i.h.bf16 %v1354_v2  ;;  %v1355_v43 = vunpack.i.l.bf16 %v1354_v2  ;;  %v708_v2 = vrot.slane %v242_v33, 2 }
  0x96   : > { %v2114_v10 = vpop.permute.xlu1 %1308 }
  0x97   : > { %v1299_v27 = vpop.permute.xlu0 %1298 }
  0x98   : > { %v1301_v28 = vunpack.i.h.bf16 %v1299_v27  ;;  %v1300_v62 = vunpack.i.l.bf16 %v1299_v27  ;;  %v1310_v27 = vunpack.i.l.bf16 %v2114_v10 }
  0x9a   : > { %1533 = vrot.lane.b32.xlu2 %v1477_v37, %s1718_s30  ;;  %v763_v19 = vsel %vm761_vm2, %v1855_v12, %v1301_v28  ;;  %v762_v31 = vsel %vm761_vm2, %v1852_v11, %v1300_v62  ;;  %v655_v12 = vrot.slane %v242_v33, 1  ;;  %s1093_s30 = sshll.u32 %s1090_s23, 4  ;;  %s1094_s30 = int_to_ptr.hbm [resolvable:$true] %s1093_s30 }
  0x9b   : > { %v2129_v39 = vsel %vm778_vm3, %v762_v31, %v1340_v26  ;;  %v2132_v8 = vsel %vm778_vm3, %v763_v19, %v1341_v13  ;;  %v711_v13 = vrot.slane %v244_v38, 2  ;;  %v1311_v26 = vunpack.i.h.bf16 %v2114_v10 }
  0x9c   : > { %1528 = vrot.lane.b32.xlu1 %v2027_v20, %s1722_s9  ;;  %v2124_v34 = vpop.permute.xlu2 %1368  ;;  %v657_v3 = vsel %vm269_vm0, %v655_v12, %v656_v40  ;;  %v766_v10 = vsel %vm761_vm2, %v1841_v6, %v1310_v27  ;;  %v1325_v6 = vunpack.i.l.bf16 %v2101_v5 }
  0x9d   : > { %1523 = vrot.lane.b32.xlu0 %v1999_v53, %s1722_s9 }
  0x9e   : > { %v1314_v11 = vpop.permute.xlu1 %1313 }
  0x9f   : > { %v1316_v46 = vunpack.i.h.bf16 %v1314_v11  ;;  %v1315_v47 = vunpack.i.l.bf16 %v1314_v11  ;;  %v1304_v15 = vpop.permute.xlu0 %1303 }
  0xa0   : > { %v1306_v54 = vunpack.i.h.bf16 %v1304_v15  ;;  %v1305_v55 = vunpack.i.l.bf16 %v1304_v15 }
  0xa1   : > { %v769_v21 = vsel %vm761_vm2, %v1879_v25, %v1316_v46  ;;  %v768_v49 = vsel %vm761_vm2, %v1876_v24, %v1315_v47  ;;  %v659_v24 = vsel %vm269_vm0, %v656_v40, %v658_v4 }
  0xa2   : > { %1548 = vrot.lane.b32.xlu2 %v2062_v45, %s1721_s8  ;;  %v2143_v56 = vsel %vm778_vm3, %v768_v49, %v1355_v43  ;;  %v2146_v60 = vsel %vm778_vm3, %v769_v21, %v1356_v42  ;;  %v765_v16 = vsel %vm761_vm2, %v1897_v35, %v1306_v54  ;;  %v764_v25 = vsel %vm761_vm2, %v1887_v30, %v1305_v55 }
  0xa3   : > { %v1562_v37 = vpack.i.bf16 %v659_v24, %v657_v3  ;;  %v709_v35 = vrot.slane %v243_v36, 2  ;;  %v1552_v30 = vpack.i.bf16 %v243_v36, %v242_v33  ;;  %v767_v33 = vsel %vm761_vm2, %v1844_v7, %v1311_v26 }
  0xa4   : > { %1543 = vrot.lane.b32.xlu1 %v1487_v63, %s1719_s5  ;;  %v1384_v61 = vpop.permute.xlu2 %1383  ;;  %v1326_v7 = vunpack.i.h.bf16 %v2101_v5  ;;  %v772_v5 = vsel %vm761_vm2, %v1862_v17, %v1325_v6 }
  0xa5   : > { %1538 = vrot.lane.b32.xlu0 %v2019_v9, %s1719_s5  ;;  %v710_v9 = vsel %vm358_vm1, %v708_v2, %v709_v35  ;;  %v712_v28 = vsel %vm358_vm1, %v709_v35, %v711_v13  ;;  %v1385_v36 = vunpack.i.l.bf16 %v1384_v61 }
  0xa6   : > { %v2157_v45 = vpop.permute.xlu1 %1333  ;;  %v1572_v38 = vpack.i.bf16 %v712_v28, %v710_v9  ;;  %v773_v55 = vsel %vm761_vm2, %v1865_v18, %v1326_v7 }
  0xa7   : > { %v2159_v23 = vpop.permute.xlu0 %1328  ;;  %v1335_v24 = vunpack.i.l.bf16 %v2157_v45 }
  0xa9   : > { %v776_v26 = vsel %vm761_vm2, %v1919_v50, %v1335_v24 }
  0xaa   : > { %1563 = vrot.lane.b32.xlu2 %v1562_v37, %s1720_s6 }
  0xac   : > { %1558 = vrot.lane.b32.xlu1 %v1972_v32, %s1720_s6  ;;  %v2166_v63 = vpop.permute.xlu2 %1398  ;;  %v1386_v32 = vunpack.i.h.bf16 %v1384_v61 }
  0xad   : > { %1553 = vrot.lane.b32.xlu0 %v1552_v30, %s1721_s8 }
  0xae   : > { %v1349_v62 = vpop.permute.xlu1 %1348 }
  0xaf   : > { %v1351_v19 = vunpack.i.h.bf16 %v1349_v62  ;;  %v1350_v31 = vunpack.i.l.bf16 %v1349_v62  ;;  %v1344_v42 = vpop.permute.xlu0 %1343 }
  0xb0   : > { %v1346_v12 = vunpack.i.h.bf16 %v1344_v42  ;;  %v1345_v46 = vunpack.i.l.bf16 %v1344_v42 }
  0xb1   : > { %v783_v43 = vsel %vm778_vm3, %v766_v10, %v1350_v31  ;;  %v784_v11 = vsel %vm778_vm3, %v767_v33, %v1351_v19 }
  0xb2   : > { %1578 = vrot.lane.b32.xlu2 %v1999_v53, %s1719_s5  ;;  %v781_v47 = vsel %vm778_vm3, %v764_v25, %v1345_v46  ;;  %v782_v40 = vsel %vm778_vm3, %v765_v16, %v1346_v12 }
  0xb3   : > { %v2185_v4 = vsel %vm795_vm4, %v781_v47, %v1385_v36  ;;  %v2188_v15 = vsel %vm795_vm4, %v782_v40, %v1386_v32 }
  0xb4   : > { %1573 = vrot.lane.b32.xlu1 %v1572_v38, %s1722_s9  ;;  %v1414_v21 = vpop.permute.xlu2 %1413 }
  0xb5   : > { %1568 = vrot.lane.b32.xlu0 %v2042_v52, %s1722_s9  ;;  %v1336_v52 = vunpack.i.h.bf16 %v2157_v45  ;;  %v1416_v2 = vunpack.i.h.bf16 %v1414_v21  ;;  %v1415_v35 = vunpack.i.l.bf16 %v1414_v21 }
  0xb6   : > { %v1364_v53 = vpop.permute.xlu1 %1363 }
  0xb7   : > { %v1366_v49 = vunpack.i.h.bf16 %v1364_v53  ;;  %v1365_v54 = vunpack.i.l.bf16 %v1364_v53  ;;  %v2196_v16 = vpop.permute.xlu0 %1358 }
  0xb9   : > { %v790_v25 = vsel %vm778_vm3, %v773_v55, %v1366_v49  ;;  %v789_v3 = vsel %vm778_vm3, %v772_v5, %v1365_v54  ;;  %v1204_v5 = vld [vmem:[%s2548_s1] sm:$0xff] }
  0xba   : > { %1593 = vrot.lane.b32.xlu2 %v2048_v29, %s1721_s8 }
  0xbc   : > { %1588 = vrot.lane.b32.xlu1 %v2055_v41, %s1721_s8  ;;  %v2208_v37 = vpop.permute.xlu2 %1428  ;;  %s1633_s8 = sshra.s32 %s1094_s30, 4  ;;  %s1634_s8 = int_to_ptr.hbm [resolvable:$true] %s1633_s8 }
  0xbd   : > { %1583 = vrot.lane.b32.xlu0 %v2027_v20, %s1719_s5  ;;  %v777_v20 = vsel %vm761_vm2, %v1922_v51, %v1336_v52  ;;  %s202_s5 = sand.u32 1, %s1689_s16   ;;  %p1640_p2 = scmp.lt.s32.totalorder %s1634_s8, %s2551_s4 }
  0xbe   : > { %v1379_v17 = vpop.permute.xlu1 %1378 }
  0xbf   : > { %v1381_v18 = vunpack.i.h.bf16 %v1379_v17  ;;  %v1380_v61 = vunpack.i.l.bf16 %v1379_v17  ;;  %v1374_v13 = vpop.permute.xlu0 %1373 }
  0xc0   : > { %v1376_v45 = vunpack.i.h.bf16 %v1374_v13  ;;  %v1375_v30 = vunpack.i.l.bf16 %v1374_v13 }
  0xc1   : > { %v2212_v29 = vsel %vm795_vm4, %v2129_v39, %v1380_v61  ;;  %v2216_v41 = vsel %vm795_vm4, %v2132_v8, %v1381_v18  ;;  %v1330_v18 = vunpack.i.l.bf16 %v2159_v23 }
  0xc2   : > { %1608 = vrot.lane.b32.xlu2 %v1993_v44, %s1722_s9  ;;  %v794_v27 = vsel %vm778_vm3, %v777_v20, %v1376_v45  ;;  %v793_v39 = vsel %vm778_vm3, %v776_v26, %v1375_v30  ;;  %v1321_v45 = vunpack.i.h.bf16 %v2093_v22  ;;  %v1320_v30 = vunpack.i.l.bf16 %v2093_v22 }
  0xc3   : > { %v2229_v8 = vsel %vm795_vm4, %v793_v39, %v1415_v35  ;;  %v2232_v9 = vsel %vm795_vm4, %v794_v27, %v1416_v2  ;;  %v1331_v2 = vunpack.i.h.bf16 %v2159_v23  ;;  %v1370_v20 = vunpack.i.l.bf16 %v2124_v34 }
  0xc4   : > { %1603 = vrot.lane.b32.xlu1 %v1915_v48, %s1720_s6  ;;  %v2240_v48 = vpop.permute.xlu2 %1443  ;;  %v1371_v26 = vunpack.i.h.bf16 %v2124_v34  ;;  %v774_v27 = vsel %vm761_vm2, %v1931_v57, %v1330_v18  ;;  %v1361_v39 = vunpack.i.h.bf16 %v2196_v16  ;;  %v770_v22 = vsel %vm761_vm2, %v1829_v0, %v1320_v30 }
  0xc5   : > { %1598 = vrot.lane.b32.xlu0 %v1936_v59, %s1720_s6  ;;  %v909_v59 = vld [vmem:[%s2548_s1 + $0x10] sm:$0x3]  ;;  %v1445_v32 = vunpack.i.l.bf16 %v2240_v48  ;;  %v775_v23 = vsel %vm761_vm2, %v1934_v58, %v1331_v2  ;;  %v1400_v34 = vunpack.i.l.bf16 %v2166_v63  ;;  %v1401_v57 = vunpack.i.h.bf16 %v2166_v63  ;;  %s1076_s6 = scalar_lea.sflag [#allocation3], %s202_s5 }
  0xc6   : > { %v1394_v50 = vpop.permute.xlu1 %1393  ;;  %v792_v58 = vsel %vm778_vm3, %v775_v23, %v1371_v26 }
  0xc7   : > { %v1396_v51 = vunpack.i.h.bf16 %v1394_v50  ;;  %v1395_v28 = vunpack.i.l.bf16 %v1394_v50  ;;  %v1389_v44 = vpop.permute.xlu0 %1388  ;;  %v1360_v50 = vunpack.i.l.bf16 %v2196_v16 }
  0xc8   : > { %v1391_v31 = vunpack.i.h.bf16 %v1389_v44  ;;  %v1390_v38 = vunpack.i.l.bf16 %v1389_v44  ;;  %v791_v44 = vsel %vm778_vm3, %v774_v27, %v1370_v20 }
  0xc9   : > { %v802_v62 = vsel %vm795_vm4, %v2143_v56, %v1395_v28  ;;  %v803_v19 = vsel %vm795_vm4, %v2146_v60, %v1396_v51  ;;  %v919_v60 = vunpack.c.l.b16 %v909_v59  ;;  %v771_v28 = vsel %vm761_vm2, %v1832_v1, %v1321_v45 }
  0xca   : > { %v2243_v33 = vsel %vm795_vm4, %v784_v11, %v1391_v31  ;;  %v2246_v10 = vsel %vm795_vm4, %v783_v43, %v1390_v38  ;;  %v787_v16 = vsel %vm778_vm3, %v770_v22, %v1360_v50  ;;  %v1446_v31 = vunpack.i.h.bf16 %v2240_v48 }
  0xcb   : > { %v922_v42 = vpack.c.b16 %v919_v60, %v919_v60  ;;  %v804_v63 = vsel %vm795_vm4, %v787_v16, %v1400_v34 }
  0xcc   : > { %v2256_v43 = vpop.permute.xlu2 %1458 }
  0xcd   : > { %1613 = vrot.lane.b32.xlu0 %v2023_v14, %s1722_s9  ;;  %v952_v40 = vsel %vm950_vm5, %v922_v42, 0  ;;  %v1205_v14 = vld [vmem:[%s2548_s1 + $0x8] sm:$0xff]  ;;  %v1461_v48 = vunpack.i.h.bf16 %v2256_v43  ;;  %s1177_s9 = sshll.u32 %s202_s5, 7 }
  0xce   : > { %v2253_v56 = vpop.permute.xlu1 %1408  ;;  %1208 = vmatpush.bf16.msra.mxu2 %v952_v40  ;;  %1209 = vmatpush.bf16.msra.mxu3 %v952_v40  ;;  %s2454_s10 = scalar_lea.vmem [#allocation2], %s1177_s9  ;;  %s1635_s9 = scalar_lea.hbm %s1634_s8, 128 }
  0xcf   : > { %v1404_v36 = vpop.permute.xlu0 %1403  ;;  %959 = vmatpush.bf16.msra.mxu0 %v952_v40  ;;  %1207 = vmatpush.bf16.msra.mxu1 %v952_v40  ;;  %v1410_v51 = vunpack.i.l.bf16 %v2253_v56  ;;  %v1411_v1 = vunpack.i.h.bf16 %v2253_v56  ;;  %v1460_v56 = vunpack.i.l.bf16 %v2256_v43  ;;  %s1091_s27 = sshll.u32 %s2454_s10, 4  ;;  %p1636_p13 = scmp.ne.s32.totalorder %s1634_s8, %s1635_s9  ;;  %s1092_s27 = int_to_ptr.vmem [resolvable:$true] %s1091_s27 }
  0xd0   : > { %v1406_v12 = vunpack.i.h.bf16 %v1404_v36  ;;  %v1405_v11 = vunpack.i.l.bf16 %v1404_v36  ;;  %p1641_p4 = scmp.lt.s32.totalorder %s1639_s13, %s1635_s9 }
  0xd1   : > { %v808_v0 = vsel %vm795_vm4, %v791_v44, %v1410_v51  ;;  %p1637_p0 = pnand %p1636_p13, %p1800_p3 }
  0xd2   : > { %v2259_v46 = vsel %vm795_vm4, %v790_v25, %v1406_v12  ;;  %v806_v47 = vsel %vm795_vm4, %v789_v3, %v1405_v11  ;;  %1211 = vmatpush.bf16.msra.mxu2 %v1205_v14  ;;  %1212 = vmatpush.bf16.msra.mxu3 %v1205_v14  ;;  %p1642_p5 = por %p1641_p4, %p1640_p2 }
  0xd3   : > { %v2266_v7 = vsel %vm812_vm6, %v806_v47, %v1445_v32  ;;  %960 = vmatpush.bf16.msra.mxu0 %v1205_v14  ;;  %1210 = vmatpush.bf16.msra.mxu1 %v1205_v14  ;;  %v809_v14 = vsel %vm795_vm4, %v792_v58, %v1411_v1  ;;  %p1638_p1 = pneg %p1637_p0 }
  0xd4   : > { %v2281_v25 = vpop.permute.xlu2 %1473 }
  0xd5   : > { %p1643_p6 = pnand %p1642_p5, %p1638_p1 }
  0xd6   : > { %v1424_v6 = vpop.permute.xlu1 %1423  ;;  %1214 = vmatpush.bf16.msra.mxu2 %v1204_v5  ;;  %1215 = vmatpush.bf16.msra.mxu3 %v1204_v5 }
  0xd7   : > { %v1426_v21 = vunpack.i.h.bf16 %v1424_v6  ;;  %v1425_v53 = vunpack.i.l.bf16 %v1424_v6  ;;  %v2268_v49 = vpop.permute.xlu0 %1418  ;;  %961 = vmatpush.bf16.msra.mxu0 %v1204_v5  ;;  %1213 = vmatpush.bf16.msra.mxu1 %v1204_v5  ;;  %v825_v6 = vsel %vm812_vm6, %v808_v0, %v1446_v31  ;;  %v1476_v5 = vunpack.i.h.bf16 %v2281_v25 }
  0xd9   : > { %v2272_v54 = vsel %vm812_vm6, %v2185_v4, %v1425_v53  ;;  %v2276_v55 = vsel %vm812_vm6, %v2188_v15, %v1426_v21 }
  0xdc   : > { %v2291_v35 = vpop.permute.xlu2 %1488 }
  0xdd   : > { %v1491_v20 = vunpack.i.h.bf16 %v2291_v35  ;;  %v1490_v27 = vunpack.i.l.bf16 %v2291_v35 }
  0xde   : > { %v1439_v3 = vpop.permute.xlu1 %1438 }
  0xdf   : > { %v1434_v52 = vpop.permute.xlu0 %1433  ;;  %v1441_v38 = vunpack.i.h.bf16 %v1439_v3  ;;  %v1440_v59 = vunpack.i.l.bf16 %v1439_v3  ;;  %v1475_v3 = vunpack.i.l.bf16 %v2281_v25 }
  0xe0   : > { %v1436_v4 = vunpack.i.h.bf16 %v1434_v52  ;;  %v1435_v24 = vunpack.i.l.bf16 %v1434_v52 }
  0xe1   : > { %v821_v21 = vsel %vm812_vm6, %v804_v63, %v1440_v59 }
  0xe2   : > { %v2284_v17 = vsel %vm812_vm6, %v803_v19, %v1436_v4  ;;  %v2287_v15 = vsel %vm812_vm6, %v802_v62, %v1435_v24  ;;  %v788_v62 = vsel %vm778_vm3, %v771_v28, %v1361_v39 }
  0xe3   : > { %v805_v40 = vsel %vm795_vm4, %v788_v62, %v1401_v57 }
  0xe4   : > { %v2320_v42 = vpop.permute.xlu2 %1503  ;;  %v822_v53 = vsel %vm812_vm6, %v805_v40, %v1441_v38 }
  0xe6   : > { %v1454_v61 = vpop.permute.xlu1 %1453 }
  0xe7   : > { %v2293_v13 = vpop.permute.xlu0 %1448  ;;  %v1456_v60 = vunpack.i.h.bf16 %v1454_v61  ;;  %v1455_v32 = vunpack.i.l.bf16 %v1454_v61  ;;  %v842_v61 = vsel %vm829_vm7, %v825_v6, %v1460_v56 }
  0xe8   : > { %v1450_v12 = vunpack.i.l.bf16 %v2293_v13 }
  0xe9   : > { %v838_v52 = vsel %vm829_vm7, %v821_v21, %v1455_v32  ;;  %v839_v4 = vsel %vm829_vm7, %v822_v53, %v1456_v60  ;;  %v1431_v32 = vunpack.i.h.bf16 %v2208_v37 }
  0xea   : > { %v826_v43 = vsel %vm812_vm6, %v809_v14, %v1450_v12  ;;  %v1421_v12 = vunpack.i.h.bf16 %v2268_v49 }
  0xeb   : > { %v843_v39 = vsel %vm829_vm7, %v826_v43, %v1461_v48 }
  0xec   : > { %v1519_v58 = vpop.permute.xlu2 %1518 }
  0xed   : > { %v1520_v43 = vunpack.i.l.bf16 %v1519_v58 }
  0xee   : > { %v1469_v19 = vpop.permute.xlu1 %1468 }
  0xef   : > { %v1464_v36 = vpop.permute.xlu0 %1463  ;;  %v1471_v2 = vunpack.i.h.bf16 %v1469_v19  ;;  %v1470_v45 = vunpack.i.l.bf16 %v1469_v19 }
  0xf0   : > { %v1466_v11 = vunpack.i.h.bf16 %v1464_v36  ;;  %v1465_v47 = vunpack.i.l.bf16 %v1464_v36  ;;  %v1430_v36 = vunpack.i.l.bf16 %v2208_v37 }
  0xf1   : > { %v859_v57 = vsel %vm846_vm8, %v842_v61, %v1470_v45  ;;  %v860_v62 = vsel %vm846_vm8, %v843_v39, %v1471_v2 }
  0xf2   : > { %v855_v24 = vsel %vm846_vm8, %v838_v52, %v1465_v47  ;;  %v856_v18 = vsel %vm846_vm8, %v839_v4, %v1466_v11  ;;  %v1420_v11 = vunpack.i.l.bf16 %v2268_v49  ;;  %v817_v53 = vsel %vm812_vm6, %v2246_v10, %v1430_v36 }
  0xf3   : > { %v872_v23 = vsel %vm863_vm9, %v855_v24, %v1475_v3  ;;  %v873_v51 = vsel %vm863_vm9, %v856_v18, %v1476_v5  ;;  %v818_v5 = vsel %vm812_vm6, %v2243_v33, %v1431_v32  ;;  %v814_v3 = vsel %vm812_vm6, %v2216_v41, %v1421_v12 }
  0xf4   : > { %v2353_v60 = vpop.permute.xlu2 %1533  ;;  %v813_v37 = vsel %vm812_vm6, %v2212_v29, %v1420_v11  ;;  %v1506_v49 = vunpack.i.h.bf16 %v2320_v42  ;;  %v1505_v52 = vunpack.i.l.bf16 %v2320_v42  ;;  %v1521_v4 = vunpack.i.h.bf16 %v1519_v58 }
  0xf6   : > { %v1484_v30 = vpop.permute.xlu1 %1483 }
  0xf7   : > { %v1486_v25 = vunpack.i.h.bf16 %v1484_v30  ;;  %v1485_v26 = vunpack.i.l.bf16 %v1484_v30  ;;  %v1479_v50 = vpop.permute.xlu0 %1478 }
  0xf8   : > { %v1481_v28 = vunpack.i.h.bf16 %v1479_v50  ;;  %v1480_v22 = vunpack.i.l.bf16 %v1479_v50 }
  0xf9   : > { %v889_v34 = vsel %vm880_vm10, %v872_v23, %v1485_v26  ;;  %v890_v44 = vsel %vm880_vm10, %v873_v51, %v1486_v25 }
  0xfa   : > { %v901_v16 = vpack.c.bf16 %v890_v44, %v889_v34  ;;  %v876_v35 = vsel %vm863_vm9, %v859_v57, %v1480_v22  ;;  %v877_v19 = vsel %vm863_vm9, %v860_v62, %v1481_v28 }
  0xfb   : > { %v893_v31 = vsel %vm880_vm10, %v876_v35, %v1490_v27  ;;  %v894_v1 = vsel %vm880_vm10, %v877_v19, %v1491_v20 }
  0xfc   : > { %1193 = vmatmul.msk.bf16.vlgmr.msra.gmra.mxu2 %vm925_vm11, %v901_v16  ;;  %v903_v38 = vpack.c.bf16 %v894_v1, %v893_v31  ;;  %v1549_v30 = vpop.permute.xlu2 %1548  ;;  %v1451_v1 = vunpack.i.h.bf16 %v2293_v13 }
  0xfe   : > { %v1499_v59 = vpop.permute.xlu1 %1498  ;;  %1195 = vmatmul.msk.bf16.vlgmr.msra.gmra.mxu3 %vm925_vm11, %v903_v38 }
  0xff   : > { %v1494_v0 = vpop.permute.xlu0 %1493  ;;  %v1501_v47 = vunpack.i.h.bf16 %v1499_v59  ;;  %v1500_v48 = vunpack.i.l.bf16 %v1499_v59  ;;  %v1536_v59 = vunpack.i.h.bf16 %v2353_v60 }
 0x100   : > { %v1496_v40 = vunpack.i.h.bf16 %v1494_v0  ;;  %v1495_v14 = vunpack.i.l.bf16 %v1494_v0  ;;  %v1535_v0 = vunpack.i.l.bf16 %v2353_v60 }
 0x101   : > { %v834_v24 = vsel %vm829_vm7, %v817_v53, %v1500_v48  ;;  %v835_v18 = vsel %vm829_vm7, %v818_v5, %v1501_v47  ;;  %v828_v13 = vsel %vm812_vm6, %v2232_v9, %v1536_v59 }
 0x102   : > { %v830_v10 = vsel %vm829_vm7, %v813_v37, %v1495_v14  ;;  %v831_v33 = vsel %vm829_vm7, %v814_v3, %v1496_v40  ;;  %v827_v40 = vsel %vm812_vm6, %v2229_v8, %v1535_v0  ;;  %v1551_v14 = vunpack.i.h.bf16 %v1549_v30 }
 0x103   : > { %v847_v25 = vsel %vm846_vm8, %v830_v10, %v1505_v52  ;;  %v848_v26 = vsel %vm846_vm8, %v831_v33, %v1506_v49 }
 0x104   : > { %v1564_v31 = vpop.permute.xlu2 %1563 }
 0x105   : > { %v1566_v60 = vunpack.i.h.bf16 %v1564_v31  ;;  %v1565_v53 = vunpack.i.l.bf16 %v1564_v31 }
 0x106   : > { %v1514_v63 = vpop.permute.xlu1 %1513 }
 0x107   : > { %v1509_v56 = vpop.permute.xlu0 %1508  ;;  %v1516_v2 = vunpack.i.h.bf16 %v1514_v63  ;;  %v1515_v41 = vunpack.i.l.bf16 %v1514_v63 }
 0x108   : > { %v1511_v6 = vunpack.i.h.bf16 %v1509_v56  ;;  %v1510_v21 = vunpack.i.l.bf16 %v1509_v56  ;;  %v824_v56 = vsel %vm812_vm6, %v2259_v46, %v1451_v1 }
 0x109   : > { %v864_v34 = vsel %vm863_vm9, %v847_v25, %v1515_v41  ;;  %v865_v44 = vsel %vm863_vm9, %v848_v26, %v1516_v2 }
 0x10a   : > { %v851_v61 = vsel %vm846_vm8, %v834_v24, %v1510_v21  ;;  %v852_v29 = vsel %vm846_vm8, %v835_v18, %v1511_v6  ;;  %v1550_v6 = vunpack.i.l.bf16 %v1549_v30 }
 0x10b   : > { %v868_v39 = vsel %vm863_vm9, %v851_v61, %v1520_v43  ;;  %v869_v50 = vsel %vm863_vm9, %v852_v29, %v1521_v4 }
 0x10c   : > { %v1579_v21 = vpop.permute.xlu2 %1578 }
 0x10e   : > { %v1529_v45 = vpop.permute.xlu1 %1528 }
 0x10f   : > { %v1531_v20 = vunpack.i.h.bf16 %v1529_v45  ;;  %v1530_v42 = vunpack.i.l.bf16 %v1529_v45  ;;  %v1524_v27 = vpop.permute.xlu0 %1523 }
 0x110   : > { %v1526_v23 = vunpack.i.h.bf16 %v1524_v27  ;;  %v1525_v51 = vunpack.i.l.bf16 %v1524_v27 }
 0x111   : > { %v885_v28 = vsel %vm880_vm10, %v868_v39, %v1530_v42  ;;  %v886_v22 = vsel %vm880_vm10, %v869_v50, %v1531_v20 }
 0x112   : > { %v899_v57 = vpack.c.bf16 %v886_v22, %v885_v28  ;;  %v881_v62 = vsel %vm880_vm10, %v864_v34, %v1525_v51  ;;  %v882_v16 = vsel %vm880_vm10, %v865_v44, %v1526_v23  ;;  %v1581_v51 = vunpack.i.h.bf16 %v1579_v21 }
 0x113   : > { %v897_v58 = vpack.c.bf16 %v882_v16, %v881_v62  ;;  %v1580_v28 = vunpack.i.l.bf16 %v1579_v21 }
 0x114   : > { %1191 = vmatmul.msk.bf16.vlgmr.msra.gmra.mxu1 %vm925_vm11, %v899_v57  ;;  %v1594_v27 = vpop.permute.xlu2 %1593 }
 0x115   : > { %1189 = vmatmul.msk.bf16.vlgmr.msra.gmra.mxu0 %vm925_vm11, %v897_v58  ;;  %v832_v58 = vsel %vm829_vm7, %v2272_v54, %v1580_v28 }
 0x116   : > { %v1544_v35 = vpop.permute.xlu1 %1543 }
 0x117   : > { %v1539_v19 = vpop.permute.xlu0 %1538  ;;  %v1546_v32 = vunpack.i.h.bf16 %v1544_v35  ;;  %v1545_v36 = vunpack.i.l.bf16 %v1544_v35  ;;  %v833_v35 = vsel %vm829_vm7, %v2276_v55, %v1581_v51 }
 0x118   : > { %v1541_v12 = vunpack.i.h.bf16 %v1539_v19  ;;  %v1540_v11 = vunpack.i.l.bf16 %v1539_v19 }
 0x119   : > { %v844_v5 = vsel %vm829_vm7, %v827_v40, %v1545_v36  ;;  %v845_v37 = vsel %vm829_vm7, %v828_v13, %v1546_v32 }
 0x11a   : > { %v840_v3 = vsel %vm829_vm7, %v2266_v7, %v1540_v11  ;;  %v841_v46 = vsel %vm829_vm7, %v824_v56, %v1541_v12  ;;  %v1596_v11 = vunpack.i.h.bf16 %v1594_v27 }
 0x11b   : > { %v857_v18 = vsel %vm846_vm8, %v840_v3, %v1550_v6  ;;  %v858_v10 = vsel %vm846_vm8, %v841_v46, %v1551_v14  ;;  %v2440_v46 = vld [vmem:[%s2549_s2] ss:$0 sm:$0xff] }
 0x11c   : > { %v1609_v22 = vpop.permute.xlu2 %1608 }
 0x11d   : > { %v1611_v62 = vunpack.i.h.bf16 %v1609_v22  ;;  %v1610_v16 = vunpack.i.l.bf16 %v1609_v22 }
 0x11e   : > { %v1559_v38 = vpop.permute.xlu1 %1558 }
 0x11f   : > { %v1554_v63 = vpop.permute.xlu0 %1553  ;;  %v1561_v52 = vunpack.i.h.bf16 %v1559_v38  ;;  %v1560_v9 = vunpack.i.l.bf16 %v1559_v38 }
 0x120   : > { %v1556_v47 = vunpack.i.h.bf16 %v1554_v63  ;;  %v1555_v48 = vunpack.i.l.bf16 %v1554_v63 }
 0x121   : > { %v874_v30 = vsel %vm863_vm9, %v857_v18, %v1560_v9  ;;  %v875_v20 = vsel %vm863_vm9, %v858_v10, %v1561_v52 }
 0x122   : > { %v861_v49 = vsel %vm846_vm8, %v844_v5, %v1555_v48  ;;  %v862_v8 = vsel %vm846_vm8, %v845_v37, %v1556_v47  ;;  %v1595_v47 = vunpack.i.l.bf16 %v1594_v27 }
 0x123   : > { %v878_v61 = vsel %vm863_vm9, %v861_v49, %v1565_v53  ;;  %v879_v7 = vsel %vm863_vm9, %v862_v8, %v1566_v60  ;;  %v2446_v49 = vld [vmem:[%s2550_s3] ss:$0 sm:$0xff] }
 0x126   : > { %v1574_v4 = vpop.permute.xlu1 %1573 }
 0x127   : > { %v1576_v43 = vunpack.i.h.bf16 %v1574_v4  ;;  %v1575_v24 = vunpack.i.l.bf16 %v1574_v4  ;;  %v1569_v33 = vpop.permute.xlu0 %1568 }
 0x128   : > { %v1571_v29 = vunpack.i.h.bf16 %v1569_v33  ;;  %v1570_v2 = vunpack.i.l.bf16 %v1569_v33 }
 0x129   : > { %v895_v41 = vsel %vm880_vm10, %v878_v61, %v1575_v24  ;;  %v896_v45 = vsel %vm880_vm10, %v879_v7, %v1576_v43 }
 0x12a   : > { %v904_v42 = vpack.c.bf16 %v896_v45, %v895_v41  ;;  %v891_v25 = vsel %vm880_vm10, %v874_v30, %v1570_v2  ;;  %v892_v26 = vsel %vm880_vm10, %v875_v20, %v1571_v29 }
 0x12b   : > { %v902_v39 = vpack.c.bf16 %v892_v26, %v891_v25 }
 0x12c   : > { %1196 = vmatmul.msk.bf16.gmra.mxu3 %vm925_vm11, %v904_v42 }
 0x12d   : > { %1194 = vmatmul.msk.bf16.gmra.mxu2 %vm925_vm11, %v902_v39 }
 0x12e   : > { %v1589_v23 = vpop.permute.xlu1 %1588 }
 0x12f   : > { %v1584_v50 = vpop.permute.xlu0 %1583  ;;  %v1591_v34 = vunpack.i.h.bf16 %v1589_v23  ;;  %v1590_v44 = vunpack.i.l.bf16 %v1589_v23 }
 0x130   : > { %v1586_v59 = vunpack.i.h.bf16 %v1584_v50  ;;  %v1585_v0 = vunpack.i.l.bf16 %v1584_v50 }
 0x131   : > { %v849_v1 = vsel %vm846_vm8, %v832_v58, %v1590_v44  ;;  %v850_v38 = vsel %vm846_vm8, %v833_v35, %v1591_v34 }
 0x132   : > { %v836_v48 = vsel %vm829_vm7, %v2287_v15, %v1585_v0  ;;  %v837_v56 = vsel %vm829_vm7, %v2284_v17, %v1586_v59 }
 0x133   : > { %v853_v6 = vsel %vm846_vm8, %v836_v48, %v1595_v47  ;;  %v854_v21 = vsel %vm846_vm8, %v837_v56, %v1596_v11 }
 0x136   : > { %v1604_v32 = vpop.permute.xlu1 %1603 }
 0x137   : > { %v1599_v57 = vpop.permute.xlu0 %1598  ;;  %v1606_v40 = vunpack.i.h.bf16 %v1604_v32  ;;  %v1605_v13 = vunpack.i.l.bf16 %v1604_v32 }
 0x138   : > { %v1601_v19 = vunpack.i.h.bf16 %v1599_v57  ;;  %v1600_v31 = vunpack.i.l.bf16 %v1599_v57 }
 0x139   : > { %v870_v5 = vsel %vm863_vm9, %v853_v6, %v1605_v13  ;;  %v871_v15 = vsel %vm863_vm9, %v854_v21, %v1606_v40 }
 0x13a   : > { %v866_v36 = vsel %vm863_vm9, %v849_v1, %v1600_v31  ;;  %v867_v63 = vsel %vm863_vm9, %v850_v38, %v1601_v19 }
 0x13b   : > { %v883_v12 = vsel %vm880_vm10, %v866_v36, %v1610_v16  ;;  %v884_v54 = vsel %vm880_vm10, %v867_v63, %v1611_v62 }
 0x13c   : > { %v898_v55 = vpack.c.bf16 %v884_v54, %v883_v12 }
 0x13e   : > { %1190 = vmatmul.msk.bf16.gmra.mxu0 %vm925_vm11, %v898_v55 }
 0x13f   : > { %v1614_v14 = vpop.permute.xlu0 %1613 }
 0x140   : > { %v1616_v60 = vunpack.i.h.bf16 %v1614_v14  ;;  %v1615_v53 = vunpack.i.l.bf16 %v1614_v14 }
 0x142   : > { %v887_v37 = vsel %vm880_vm10, %v870_v5, %v1615_v53  ;;  %v888_v17 = vsel %vm880_vm10, %v871_v15, %v1616_v60 }
 0x143   : > { %v900_v3 = vpack.c.bf16 %v888_v17, %v887_v37 }
 0x145   : > { %1192 = vmatmul.msk.bf16.gmra.mxu1 %vm925_vm11, %v900_v3 }
 0x17f   : > { %v983_v8 = vpop.f32.mrf.mxu2 }
 0x180   : > { %v1015_v52 = vmul.f32 %v2440_v46, %v983_v8 }
 0x181   : > { %v993_v4 = vpop.f32.mrf.mxu3 }
 0x182   : > { %v1035_v9 = vadd.f32 %v2446_v49, %v1015_v52  ;;  %v1019_v43 = vmul.f32 %v2440_v46, %v993_v4 }
 0x184   : > { %v1051_v24 = vmax.f32 %v1035_v9, 0.0  ;;  %v1039_v18 = vadd.f32 %v2446_v49, %v1019_v43 }
 0x186   : > { %1067 = vst [vmem:[%s2454_s10 + $0x40] sm:$0xff] %v1051_v24  ;;  %v1055_v10 = vmax.f32 %v1039_v18, 0.0 }
 0x187   : > { %v985_v33 = vpop.f32.mrf.mxu2 }
 0x188   : > { %v1016_v61 = vmul.f32 %v2440_v46, %v985_v33  ;;  %1071 = vst [vmem:[%s2454_s10 + $0x60] sm:$0xff] %v1055_v10 }
 0x189   : > { %v995_v29 = vpop.f32.mrf.mxu3 }
 0x18a   : > { %v1036_v7 = vadd.f32 %v2446_v49, %v1016_v61  ;;  %v1020_v2 = vmul.f32 %v2440_v46, %v995_v29 }
 0x18c   : > { %v1052_v41 = vmax.f32 %v1036_v7, 0.0  ;;  %v1040_v45 = vadd.f32 %v2446_v49, %v1020_v2 }
 0x18e   : > { %1068 = vst [vmem:[%s2454_s10 + $0x48] sm:$0xff] %v1052_v41  ;;  %v1056_v30 = vmax.f32 %v1040_v45, 0.0 }
 0x190   : > { %1072 = vst [vmem:[%s2454_s10 + $0x68] sm:$0xff] %v1056_v30 }
 0x191   : > { %v973_v20 = vpop.f32.mrf.mxu1 }
 0x192   : > { %v1011_v42 = vmul.f32 %v2440_v46, %v973_v20  ;;  %v963_v25 = vpop.f32.mrf.mxu0 }
 0x193   : > { %v1007_v26 = vmul.f32 %v2440_v46, %v963_v25 }
 0x194   : > { %v1031_v27 = vadd.f32 %v2446_v49, %v1011_v42 }
 0x195   : > { %v1027_v39 = vadd.f32 %v2446_v49, %v1007_v26 }
 0x196   : > { %v1047_v50 = vmax.f32 %v1031_v27, 0.0 }
 0x197   : > { %v1043_v23 = vmax.f32 %v1027_v39, 0.0 }
 0x198   : > { %1063 = vst [vmem:[%s2454_s10 + $0x20] sm:$0xff] %v1047_v50 }
 0x199   : > { %v975_v51 = vpop.f32.mrf.mxu1  ;;  %1059 = vst [vmem:[%s2454_s10] sm:$0xff] %v1043_v23 }
 0x19a   : > { %v1012_v28 = vmul.f32 %v2440_v46, %v975_v51  ;;  %v965_v22 = vpop.f32.mrf.mxu0 }
 0x19b   : > { %v1008_v34 = vmul.f32 %v2440_v46, %v965_v22 }
 0x19c   : > { %v1032_v44 = vadd.f32 %v2446_v49, %v1012_v28 }
 0x19d   : > { %v1028_v57 = vadd.f32 %v2446_v49, %v1008_v34 }
 0x19e   : > { %v1048_v62 = vmax.f32 %v1032_v44, 0.0 }
 0x19f   : > { %v1044_v16 = vmax.f32 %v1028_v57, 0.0 }
 0x1a0   : > { %1064 = vst [vmem:[%s2454_s10 + $0x28] sm:$0xff] %v1048_v62 }
 0x1a1   : > { %1060 = vst [vmem:[%s2454_s10 + $0x8] sm:$0xff] %v1044_v16 }
 0x1af   : > { %v998_v58 = vpop.f32.mrf.mxu3 }
 0x1b0   : > { %v1021_v35 = vmul.f32 %v2440_v46, %v998_v58  ;;  %v988_v19 = vpop.f32.mrf.mxu2 }
 0x1b1   : > { %v1017_v31 = vmul.f32 %v2440_v46, %v988_v19 }
 0x1b2   : > { %v1041_v1 = vadd.f32 %v2446_v49, %v1021_v35 }
 0x1b3   : > { %v1037_v38 = vadd.f32 %v2446_v49, %v1017_v31 }
 0x1b4   : > { %v1057_v59 = vmax.f32 %v1041_v1, 0.0 }
 0x1b5   : > { %v1053_v0 = vmax.f32 %v1037_v38, 0.0 }
 0x1b6   : > { %1073 = vst [vmem:[%s2454_s10 + $0x70] sm:$0xff] %v1057_v59 }
 0x1b7   : > { %v1000_v32 = vpop.f32.mrf.mxu3  ;;  %1069 = vst [vmem:[%s2454_s10 + $0x50] sm:$0xff] %v1053_v0 }
 0x1b8   : > { %v1022_v36 = vmul.f32 %v2440_v46, %v1000_v32  ;;  %v990_v63 = vpop.f32.mrf.mxu2 }
 0x1b9   : > { %v1018_v12 = vmul.f32 %v2440_v46, %v990_v63 }
 0x1ba   : > { %v1042_v54 = vadd.f32 %v2446_v49, %v1022_v36 }
 0x1bb   : > { %v1038_v11 = vadd.f32 %v2446_v49, %v1018_v12  ;;  %v968_v55 = vpop.f32.mrf.mxu0 }
 0x1bc   : > { %v1058_v47 = vmax.f32 %v1042_v54, 0.0  ;;  %v1009_v48 = vmul.f32 %v2440_v46, %v968_v55 }
 0x1bd   : > { %v1054_v56 = vmax.f32 %v1038_v11, 0.0 }
 0x1be   : > { %1074 = vst [vmem:[%s2454_s10 + $0x78] sm:$0xff] %v1058_v47  ;;  %v1029_v40 = vadd.f32 %v2446_v49, %v1009_v48 }
 0x1bf   : > { %1070 = vst [vmem:[%s2454_s10 + $0x58] sm:$0xff] %v1054_v56 }
 0x1c0   : > { %v1045_v13 = vmax.f32 %v1029_v40, 0.0 }
 0x1c2   : > { %1061 = vst [vmem:[%s2454_s10 + $0x10] sm:$0xff] %v1045_v13  ;;  %v978_v14 = vpop.f32.mrf.mxu1 }
 0x1c3   : > { %v1013_v6 = vmul.f32 %v2440_v46, %v978_v14  ;;  %v970_v21 = vpop.f32.mrf.mxu0 }
 0x1c4   : > { %v1010_v60 = vmul.f32 %v2440_v46, %v970_v21 }
 0x1c5   : > { %v1033_v53 = vadd.f32 %v2446_v49, %v1013_v6 }
 0x1c6   : > { %v1030_v5 = vadd.f32 %v2446_v49, %v1010_v60 }
 0x1c7   : > { %v1049_v15 = vmax.f32 %v1033_v53, 0.0 }
 0x1c8   : > { %v1046_v37 = vmax.f32 %v1030_v5, 0.0 }
 0x1c9   : > { %1065 = vst [vmem:[%s2454_s10 + $0x30] sm:$0xff] %v1049_v15 }
 0x1ca   : > { %1062 = vst [vmem:[%s2454_s10 + $0x18] sm:$0xff] %v1046_v37  ;;  %v980_v17 = vpop.f32.mrf.mxu1 }
 0x1cb   : > { %v1014_v3 = vmul.f32 %v2440_v46, %v980_v17 }
 0x1cd   : > { %v1034_v8 = vadd.f32 %v2446_v49, %v1014_v3 }
 0x1cf   : > { %v1050_v52 = vmax.f32 %v1034_v8, 0.0 }
 0x1d1   : > { %1066 = vst [vmem:[%s2454_s10 + $0x38] sm:$0xff] %v1050_v52 }
 0x1d2   : > { %1646 = shalt.err (!%p1643_p6)
}
 0x1d3   : > { %s1723_s5 = smov 128  }
 0x1d4   : > { %1217 = dma.vmem_to_hbm [thread:$0]  (%p1800_p3), %s1092_s27, 2048, %s1094_s30, %s1076_s6, %s1723_s5, %s1723_s5, %s1716_s24  }
 0x1d5 PF: > { %p1223_p7 = scmp.ge.s32.totalorder %s1713_s22, 2  ;;  %s1108_s10 = sand.u32 1, %s1685_s15  }
 0x1d6   : > { %s1109_s19 = scalar_lea.sflag [#allocation3], %s1108_s10 }
 0x1d7   : > { %p1220_p9 = pnand %p1223_p7, %p1809_p8 }
 0x1d9   : > { %p1221_p10 = pneg %p1220_p9 }
 0x1db   : > { %1680 = dma.done.wait (%p1221_p10), %s1109_s19, 2048  }
 0x1dc   : > { %1682 = vsyncadd (%p1221_p10), %s1109_s19, 4294965248  ;;  %s17_s22 = sadd.s32 1, %s1713_s22   ;;  %s2554_s15 = smov %s1689_s16 }
 0x1dd   : > { %p14_p11 = scmp.ge.s32.totalorder %s17_s22, 6   ;;  %s2555_s16 = smov %s1693_s17 }
 0x1de   : > { %s2556_s17 = smov %s1818_s7  ;;  %s2557_s18 = smov %s1705_s20 }
 0x1df   : > { %s2558_s19 = smov %s1709_s21  ;;  %s2559_s20 = smov %s2562_s25 }
 0x1e0   : > { %s2560_s21 = smov %s2566_s26  ;;  %16 = sbr.rel (!%p14_p11) target bundleno = 5 (0x5), region = 72 }
 0x1e5   :  { %1115 = vsyncpa [#allocation3], 1 }
 0x1e6   :  { %1117 = vsyncpa [#allocation3 + $0x1], 1 }

</bundles_post_ra>
